<compile_context>
chip_gen: v5e
topology: v5e:2x2
jax: 0.10.0
libtpu: 0.0.40
codegen_flags: <defaults>
</compile_context>

<pallas_src>
import jax
import jax.numpy as jnp
import numpy as np
from jax.experimental import pallas as pl
from jax.experimental.pallas import tpu as pltpu

LN_EPS = 1e-5  # PyTorch nn.LayerNorm default

# VMEM budgeting (conservative for v7x: 64 MiB physical, keep headroom).
_VMEM_LIMIT_BYTES = 48 * 1024 * 1024
_VMEM_TILE_BUDGET = 32 * 1024 * 1024


def temporal_embedding_kernel(video_ref, ends_ref, w_ref, consts_ref, pos_ref,
                              out_ref):
    # video_ref:  (Bt, S, In) f32      ends_ref: (Bt, 1, 1) int32
    # w_ref:      (In, D) f32          consts_ref: (5, D) f32
    #                                  rows: [proj bias, bos, eos, gamma, beta]
    # pos_ref:    (Sp2, D) f32         out_ref: (Bt, Sp2, D) out_dtype
    Bt, S, In = video_ref.shape
    _, Sp2, D = out_ref.shape

    b_row     = consts_ref[0:1, :]          # (1, D)
    bos_row   = consts_ref[1:2, :]
    eos_row   = consts_ref[2:3, :]
    gamma_row = consts_ref[3:4, :]
    beta_row  = consts_ref[4:5, :]

    # --- linear projection: one (Bt*S, In) x (In, D) MXU matmul ---
    x = video_ref[...].reshape(Bt * S, In)
    proj = jnp.dot(x, w_ref[...], preferred_element_type=jnp.float32)
    proj = (proj + b_row).reshape(Bt, S, D)

    # --- assemble [bos ; proj ; zeros] along the sequence axis in vregs ---
    bos = jnp.broadcast_to(bos_row.reshape(1, 1, D), (Bt, 1, D))
    pad = jnp.zeros((Bt, 1, D), jnp.float32)
    emb = jnp.concatenate([bos, proj, pad], axis=1)              # (Bt, Sp2, D)

    # --- eos scatter (video_embed[i, ends[i]] = eos) folded with + pos ---
    ends_blk = ends_ref[...]                                     # (Bt, 1, 1)
    row_ids = jax.lax.broadcasted_iota(jnp.int32, (Bt, Sp2, 1), 1)
    emb = (jnp.where(row_ids == ends_blk, eos_row.reshape(1, 1, D), emb)
           + pos_ref[...].reshape(1, Sp2, D))

    # --- LayerNorm over the embedding dim (one-pass stats, f32) ---
    inv_d = jnp.float32(1.0 / D)
    s1 = jnp.sum(emb, axis=-1, keepdims=True)
    s2 = jnp.sum(emb * emb, axis=-1, keepdims=True)
    mean = s1 * inv_d
    var = jnp.maximum(s2 * inv_d - mean * mean, 0.0)
    emb = (emb - mean) * jax.lax.rsqrt(var + LN_EPS)
    emb = emb * gamma_row.reshape(1, 1, D) + beta_row.reshape(1, 1, D)

    # Dropout(p=0) -> identity. Single unmasked, lane-dense full-tile store.
    out_ref[...] = emb.astype(out_ref.dtype)


def _pick_batch_block(B, S, Sp2, In, D, out_itemsize,
                      budget_bytes=_VMEM_TILE_BUDGET):
    """Largest divisor of B whose per-step footprint fits the VMEM budget,
    capped at B//2 so the parallel grid has >= 2 steps (v7x megacore)."""
    s_pad    = pl.cdiv(S, 8) * 8
    sp2_pad  = pl.cdiv(Sp2, 8) * 8
    in_lanes = pl.cdiv(In, 128) * 128          # In=16 pads to 128 lanes
    d_lanes  = pl.cdiv(D, 128) * 128

    bytes_video = 2 * s_pad * in_lanes * 4               # double-buffered f32
    bytes_ends  = 2 * 8 * 128 * 4                        # (1,1) tile pads to (8,128)
    bytes_out   = 2 * sp2_pad * d_lanes * out_itemsize   # double-buffered out
    bytes_work  = int(2.5 * sp2_pad * d_lanes * 4)       # f32 emb/proj working slab
    per_bt = bytes_video + bytes_ends + bytes_out + bytes_work

    target = max(1, budget_bytes // per_bt)
    if B >= 2:
        target = min(target, B // 2)                     # keep >= 2 grid steps
    target = min(target, B)
    for bt in range(int(target), 0, -1):
        if B % bt == 0:
            return bt
    return 1


def temporal_embedding(video, video_mask, params, batch_block=None,
                       out_dtype=jnp.bfloat16):
    B, S, In = video.shape
    D = params["w"].shape[1]
    Sp2 = S + 2
    out_itemsize = jnp.dtype(out_dtype).itemsize

    Bt = (batch_block if batch_block is not None
          else _pick_batch_block(B, S, Sp2, In, D, out_itemsize))
    assert B % Bt == 0, "batch_block must divide the batch size"

    # ends = mask.sum(-1) - 1, with torch negative-index wrap for all-zero rows.
    ends = jnp.sum(video_mask.astype(jnp.int32), axis=1) - 1       # (B,)
    ends = jnp.where(ends < 0, ends + Sp2, ends)
    ends3 = ends.reshape(B, 1, 1)                                  # vector-loadable

    # Stack the five (D,) constants into one (5, D) operand.
    consts = jnp.stack([params["b"], params["bos"], params["eos"],
                        params["gamma"], params["beta"]], axis=0)  # (5, D)
    pos = params["pos_table"][:Sp2]                                # (Sp2, D)

    cost = pl.CostEstimate(
        flops=2 * B * S * In * D,
        transcendentals=B * Sp2,
        bytes_accessed=(4 * (B * S * In + In * D + (Sp2 + 5) * D + B)
                        + out_itemsize * B * Sp2 * D),
    )

    grid_spec = pltpu.PrefetchScalarGridSpec(
        num_scalar_prefetch=0,
        grid=(B // Bt,),
        in_specs=[
            pl.BlockSpec((Bt, S, In), lambda b: (b, 0, 0)),   # video
            pl.BlockSpec((Bt, 1, 1), lambda b: (b, 0, 0)),    # ends
            pl.BlockSpec((In, D), lambda b: (0, 0)),          # proj weight
            pl.BlockSpec((5, D), lambda b: (0, 0)),           # stacked constants
            pl.BlockSpec((Sp2, D), lambda b: (0, 0)),         # pos-embed slice
        ],
        out_specs=pl.BlockSpec((Bt, Sp2, D), lambda b: (b, 0, 0)),
    )

    return pl.pallas_call(
        temporal_embedding_kernel,
        out_shape=jax.ShapeDtypeStruct((B, Sp2, D), out_dtype),
        grid_spec=grid_spec,
        compiler_params=pltpu.CompilerParams(
            # Batch blocks are independent -> shard across TCs on v7x megacore.
            dimension_semantics=("parallel",),
            vmem_limit_bytes=_VMEM_LIMIT_BYTES),
        cost_estimate=cost,
    )(video, ends3, params["w"], consts, pos)


def temporal_embedding_reference(video, video_mask, params):
    """Pure-JAX mirror of the PyTorch forward, for verification (f32)."""
    w, b = params["w"], params["b"]
    bos, eos = params["bos"], params["eos"]
    pos = params["pos_table"]
    gamma, beta = params["gamma"], params["beta"]

    proj = video @ w + b                                           # (B, S, D)
    B, S, D = proj.shape
    emb = jnp.concatenate(
        [jnp.broadcast_to(bos, (B, 1, D)), proj,
         jnp.zeros((B, 1, D), jnp.float32)], axis=1)               # (B, S+2, D)
    ends = jnp.sum(video_mask.astype(jnp.int32), axis=1) - 1
    ends = jnp.where(ends < 0, ends + S + 2, ends)                 # torch wrap
    emb = emb.at[jnp.arange(B), ends].set(eos)
    emb = emb + pos[None, :S + 2]
    mean = emb.mean(-1, keepdims=True)
    var = ((emb - mean) ** 2).mean(-1, keepdims=True)
    return (emb - mean) / jnp.sqrt(var + LN_EPS) * gamma + beta


def make_params(key, input_size, embed_size, max_pos_len=100):
    ks = jax.random.split(key, 6)
    std = 0.02  # matches trunc_normal_(std=0.02)-style init used by the module
    return {
        "w": jax.random.normal(ks[0], (input_size, embed_size), jnp.float32) * std,
        "b": jnp.zeros((embed_size,), jnp.float32),
        "bos": jax.random.normal(ks[1], (embed_size,), jnp.float32) * std,
        "eos": jax.random.normal(ks[2], (embed_size,), jnp.float32) * std,
        "pos_table": jax.random.normal(
            ks[3], (max_pos_len + 2, embed_size), jnp.float32) * std,
        "gamma": jnp.ones((embed_size,), jnp.float32),
        "beta": jnp.zeros((embed_size,), jnp.float32),
    }


if __name__ == "__main__":
    B, S, input_size, embed_size = 4, 8, 16, 128   # lane-dense embed dim
    key = jax.random.PRNGKey(0)
    k_vid, k_par = jax.random.split(key)

    video = jax.random.normal(k_vid, (B, S, input_size), jnp.float32)
    # valid lengths (incl. bos & eos slots) per batch element; the 0-length row
    # exercises the torch negative-index (ends = -1) edge case.
    lengths = jnp.array([S + 2, S, 3, 0], jnp.int32)
    video_mask = (jnp.arange(S + 2)[None, :] < lengths[:, None]).astype(jnp.int32)

    params = make_params(k_par, input_size, embed_size)
    ref = temporal_embedding_reference(video, video_mask, params)

    # Exact-math check: f32 output, auto tiling (Bt = B//2 -> 2 grid steps).
    out_f32 = jax.block_until_ready(
        temporal_embedding(video, video_mask, params, out_dtype=jnp.float32))
    np.testing.assert_allclose(np.asarray(out_f32), np.asarray(ref),
                               rtol=1e-4, atol=1e-4)

    # Default (bf16 output) path: same f32 math, cast only at the final store.
    out_bf16 = jax.block_until_ready(
        temporal_embedding(video, video_mask, params))
    np.testing.assert_allclose(np.asarray(out_bf16, dtype=np.float32),
                               np.asarray(ref), rtol=2e-2, atol=2e-2)

    # Explicit batch_block=1 path to exercise a longer grid.
    out_b1 = jax.block_until_ready(
        temporal_embedding(video, video_mask, params, batch_block=1))
    np.testing.assert_allclose(np.asarray(out_b1, dtype=np.float32),
                               np.asarray(ref), rtol=2e-2, atol=2e-2)

    print("KERNEL_OK")
</pallas_src>

<mosaic_0001>
module attributes {stable_mosaic.version = 11 : i64} {
  func.func @temporal_embedding_kernel(%arg0: i32, %arg1: memref<2x8x16xf32, #tpu.memory_space<vmem>>, %arg2: memref<2x1x1xi32, #tpu.memory_space<vmem>>, %arg3: memref<16x128xf32, #tpu.memory_space<vmem>>, %arg4: memref<5x128xf32, #tpu.memory_space<vmem>>, %arg5: memref<10x128xf32, #tpu.memory_space<vmem>>, %arg6: memref<2x10x128xf32, #tpu.memory_space<vmem>>) attributes {dimension_semantics = [#tpu.dimension_semantics<parallel>], iteration_bounds = array<i64: 2>, scalar_prefetch = 0 : i64, scratch_operands = 0 : i64, tpu.core_type = #tpu.core_type<tc>, window_params = [{transform_indices = @transform_0, window_bounds = array<i64: 2, 8, 16>}, {transform_indices = @transform_1, window_bounds = array<i64: 2, 1, 1>}, {pipeline_mode = #tpu.pipeline_mode<synchronous>, transform_indices = @transform_2, window_bounds = array<i64: 16, 128>}, {pipeline_mode = #tpu.pipeline_mode<synchronous>, transform_indices = @transform_3, window_bounds = array<i64: 5, 128>}, {pipeline_mode = #tpu.pipeline_mode<synchronous>, transform_indices = @transform_4, window_bounds = array<i64: 10, 128>}, {transform_indices = @transform_5, window_bounds = array<i64: 2, 10, 128>}]} {
    %c0 = arith.constant 0 : index
    %c0_0 = arith.constant 0 : index
    %0 = vector.load %arg4[%c0, %c0_0] : memref<5x128xf32, #tpu.memory_space<vmem>>, vector<1x128xf32>
    %c1 = arith.constant 1 : index
    %c0_1 = arith.constant 0 : index
    %1 = vector.load %arg4[%c1, %c0_1] : memref<5x128xf32, #tpu.memory_space<vmem>>, vector<1x128xf32>
    %c2 = arith.constant 2 : index
    %c0_2 = arith.constant 0 : index
    %2 = vector.load %arg4[%c2, %c0_2] : memref<5x128xf32, #tpu.memory_space<vmem>>, vector<1x128xf32>
    %c3 = arith.constant 3 : index
    %c0_3 = arith.constant 0 : index
    %3 = vector.load %arg4[%c3, %c0_3] : memref<5x128xf32, #tpu.memory_space<vmem>>, vector<1x128xf32>
    %c4 = arith.constant 4 : index
    %c0_4 = arith.constant 0 : index
    %4 = vector.load %arg4[%c4, %c0_4] : memref<5x128xf32, #tpu.memory_space<vmem>>, vector<1x128xf32>
    %c0_5 = arith.constant 0 : index
    %c0_6 = arith.constant 0 : index
    %c0_7 = arith.constant 0 : index
    %5 = vector.load %arg1[%c0_5, %c0_6, %c0_7] : memref<2x8x16xf32, #tpu.memory_space<vmem>>, vector<2x8x16xf32>
    %6 = vector.shape_cast %5 : vector<2x8x16xf32> to vector<16x16xf32>
    %c0_8 = arith.constant 0 : index
    %c0_9 = arith.constant 0 : index
    %7 = vector.load %arg3[%c0_8, %c0_9] : memref<16x128xf32, #tpu.memory_space<vmem>>, vector<16x128xf32>
    %cst = arith.constant dense<0.000000e+00> : vector<16x128xf32>
    %8 = tpu.matmul %6, %7, %cst {dimension_numbers = #tpu.dot_dimension_numbers<[1], [0], [0], [1], [0, 0, 1, 1], [], []>} : vector<16x16xf32>, vector<16x128xf32>, vector<16x128xf32> -> vector<16x128xf32>
    %9 = vector.broadcast %0 : vector<1x128xf32> to vector<16x128xf32>
    %10 = arith.addf %8, %9 : vector<16x128xf32>
    %11 = vector.shape_cast %10 : vector<16x128xf32> to vector<2x8x128xf32>
    %12 = vector.shape_cast %1 : vector<1x128xf32> to vector<1x1x128xf32>
    %13 = vector.shape_cast %12 : vector<1x1x128xf32> to vector<1x1x128xf32>
    %14 = vector.broadcast %13 : vector<1x1x128xf32> to vector<2x1x128xf32>
    %cst_10 = arith.constant 0.000000e+00 : f32
    %15 = vector.broadcast %cst_10 : f32 to vector<2x1x128xf32>
    %16 = tpu.concatenate %14, %11, %15 in 1 : vector<2x1x128xf32>, vector<2x8x128xf32>, vector<2x1x128xf32> -> vector<2x10x128xf32>
    %c0_11 = arith.constant 0 : index
    %c0_12 = arith.constant 0 : index
    %c0_13 = arith.constant 0 : index
    %17 = vector.load %arg2[%c0_11, %c0_12, %c0_13] : memref<2x1x1xi32, #tpu.memory_space<vmem>>, vector<2x1x1xi32>
    %18 = tpu.iota {dimensions = array<i32: 1>} : vector<2x10x1xi32>
    %19 = vector.broadcast %17 : vector<2x1x1xi32> to vector<2x10x1xi32>
    %20 = arith.cmpi eq, %18, %19 : vector<2x10x1xi32>
    %21 = vector.shape_cast %2 : vector<1x128xf32> to vector<1x1x128xf32>
    %22 = vector.shape_cast %20 : vector<2x10x1xi1> to vector<2x10x1xi1>
    %23 = vector.broadcast %22 : vector<2x10x1xi1> to vector<2x10x128xi1>
    %24 = vector.shape_cast %21 : vector<1x1x128xf32> to vector<1x1x128xf32>
    %25 = vector.broadcast %24 : vector<1x1x128xf32> to vector<2x10x128xf32>
    %26 = arith.select %23, %25, %16 : vector<2x10x128xi1>, vector<2x10x128xf32>
    %c0_14 = arith.constant 0 : index
    %c0_15 = arith.constant 0 : index
    %27 = vector.load %arg5[%c0_14, %c0_15] : memref<10x128xf32, #tpu.memory_space<vmem>>, vector<10x128xf32>
    %28 = vector.shape_cast %27 : vector<10x128xf32> to vector<1x10x128xf32>
    %29 = vector.broadcast %28 : vector<1x10x128xf32> to vector<2x10x128xf32>
    %30 = arith.addf %26, %29 : vector<2x10x128xf32>
    %cst_16 = arith.constant dense<0.000000e+00> : vector<2x10xf32>
    %31 = vector.multi_reduction <add>, %30, %cst_16 [2] : vector<2x10x128xf32> to vector<2x10xf32>
    %32 = vector.shape_cast %31 : vector<2x10xf32> to vector<2x10x1xf32>
    %33 = arith.mulf %30, %30 : vector<2x10x128xf32>
    %cst_17 = arith.constant dense<0.000000e+00> : vector<2x10xf32>
    %34 = vector.multi_reduction <add>, %33, %cst_17 [2] : vector<2x10x128xf32> to vector<2x10xf32>
    %35 = vector.shape_cast %34 : vector<2x10xf32> to vector<2x10x1xf32>
    %cst_18 = arith.constant 7.812500e-03 : f32
    %36 = vector.broadcast %cst_18 : f32 to vector<2x10x1xf32>
    %37 = arith.mulf %32, %36 : vector<2x10x1xf32>
    %cst_19 = arith.constant 7.812500e-03 : f32
    %38 = vector.broadcast %cst_19 : f32 to vector<2x10x1xf32>
    %39 = arith.mulf %35, %38 : vector<2x10x1xf32>
    %40 = arith.mulf %37, %37 : vector<2x10x1xf32>
    %41 = arith.subf %39, %40 : vector<2x10x1xf32>
    %cst_20 = arith.constant 0.000000e+00 : f32
    %42 = vector.broadcast %cst_20 : f32 to vector<2x10x1xf32>
    %43 = arith.maximumf %41, %42 : vector<2x10x1xf32>
    %44 = vector.broadcast %37 : vector<2x10x1xf32> to vector<2x10x128xf32>
    %45 = arith.subf %30, %44 : vector<2x10x128xf32>
    %cst_21 = arith.constant 9.99999974E-6 : f32
    %46 = vector.broadcast %cst_21 : f32 to vector<2x10x1xf32>
    %47 = arith.addf %43, %46 : vector<2x10x1xf32>
    %48 = math.rsqrt %47 : vector<2x10x1xf32>
    %49 = vector.broadcast %48 : vector<2x10x1xf32> to vector<2x10x128xf32>
    %50 = arith.mulf %45, %49 : vector<2x10x128xf32>
    %51 = vector.shape_cast %3 : vector<1x128xf32> to vector<1x1x128xf32>
    %52 = vector.broadcast %51 : vector<1x1x128xf32> to vector<2x10x128xf32>
    %53 = arith.mulf %50, %52 : vector<2x10x128xf32>
    %54 = vector.shape_cast %4 : vector<1x128xf32> to vector<1x1x128xf32>
    %55 = vector.broadcast %54 : vector<1x1x128xf32> to vector<2x10x128xf32>
    %56 = arith.addf %53, %55 : vector<2x10x128xf32>
    %c0_22 = arith.constant 0 : index
    %c0_23 = arith.constant 0 : index
    %c0_24 = arith.constant 0 : index
    %57 = vector.load %arg6[%c0_22, %c0_23, %c0_24] : memref<2x10x128xf32, #tpu.memory_space<vmem>>, vector<2x10x128xf32>
    tpu.vector_store %arg6[%c0_22, %c0_23, %c0_24], %56 {strides = array<i32>} : memref<2x10x128xf32, #tpu.memory_space<vmem>>, vector<2x10x128xf32>,
    return
  }
  func.func @transform_0(%arg0: i32) -> (i32, i32, i32) {
    %c0_i32 = arith.constant 0 : i32
    %c0_i32_0 = arith.constant 0 : i32
    %c0_i32_1 = arith.constant 0 : i32
    return %arg0, %c0_i32, %c0_i32_0 : i32, i32, i32
  }
  func.func @transform_1(%arg0: i32) -> (i32, i32, i32) {
    %c0_i32 = arith.constant 0 : i32
    %c0_i32_0 = arith.constant 0 : i32
    %c0_i32_1 = arith.constant 0 : i32
    return %arg0, %c0_i32, %c0_i32_0 : i32, i32, i32
  }
  func.func @transform_2(%arg0: i32) -> (i32, i32) {
    %c0_i32 = arith.constant 0 : i32
    %c0_i32_0 = arith.constant 0 : i32
    %c0_i32_1 = arith.constant 0 : i32
    return %c0_i32, %c0_i32_0 : i32, i32
  }
  func.func @transform_3(%arg0: i32) -> (i32, i32) {
    %c0_i32 = arith.constant 0 : i32
    %c0_i32_0 = arith.constant 0 : i32
    %c0_i32_1 = arith.constant 0 : i32
    return %c0_i32, %c0_i32_0 : i32, i32
  }
  func.func @transform_4(%arg0: i32) -> (i32, i32) {
    %c0_i32 = arith.constant 0 : i32
    %c0_i32_0 = arith.constant 0 : i32
    %c0_i32_1 = arith.constant 0 : i32
    return %c0_i32, %c0_i32_0 : i32, i32
  }
  func.func @transform_5(%arg0: i32) -> (i32, i32, i32) {
    %c0_i32 = arith.constant 0 : i32
    %c0_i32_0 = arith.constant 0 : i32
    %c0_i32_1 = arith.constant 0 : i32
    return %arg0, %c0_i32, %c0_i32_0 : i32, i32, i32
  }
}

</mosaic_0001>

<bundles_post_ra>
// kernel: tpu_custom_call.1
= control target key start
LH: loop header
LB: loop body
LE: loop exit
PB: predicated region body
PF: predicated region fallthrough
CT: control target
= control target key end

     0   :  { %10 = vsyncpa [#allocation3], 0  ;;  %s1131_s0 = inlined_call_operand.hbm [shape: f32[4,8,16], index: 0, kind: input, shape index: {}]   ;;  %s1132_s1 = inlined_call_operand.vmem [shape: s32[4,1,1], index: 1, kind: input, shape index: {}]   ;;  %s1133_s2 = inlined_call_operand.hbm [shape: f32[16,128], index: 2, kind: input, shape index: {}]   ;;  %s1134_s3 = inlined_call_operand.hbm [shape: f32[5,128], index: 3, kind: input, shape index: {}]   ;;  %s1135_s4 = inlined_call_operand.hbm [shape: f32[10,128], index: 4, kind: input, shape index: {}]   ;;  %s1136_s5 = inlined_call_operand.vmem [shape: f32[4,10,128], index: 5, kind: output, shape index: {}]  }
   0x1   :  { %12 = vsyncpa [#allocation3 + $0x1], 0 }
   0x2   :  { %13 = vsyncpa [#allocation5], 0 }
   0x3   :  { %14 = vsyncpa [#allocation8], 0  ;;  %s945_s18 = smov 0   ;;  %s947_s19 = smov 0  }
   0x4   :  { %s949_s20 = smov 0   ;;  %s951_s21 = smov 0  }
   0x5 LB: > { %s629_s22 = sadd.s32 4294967295, %s907_s21   ;;  %p40_p0 = scmp.ne.s32.totalorder %s899_s19, %s895_s18  ;;  %s907_s21 = sphi %s951_s21, %s1145_s21   ;;  %s903_s20 = sphi %s949_s20, %s1144_s20   ;;  %s899_s19 = sphi %s947_s19, %s1143_s19   ;;  %s895_s18 = sphi %s945_s18, %s1142_s18  }
   0x6   : > { %p967_p1 = scmp.eq.s32.totalorder %s629_s22, 0  ;;  %p631_p2 = scmp.ge.s32.totalorder %s907_s21, 1 }
   0x7   : > { %p166_p3 = scmp.lt.s32.totalorder %s907_s21, 3  ;;  %s177_s27 = sshll.u32 %s1133_s2, 4  ;;  %s178_s27 = int_to_ptr.hbm [resolvable:$true] %s177_s27 }
   0x8   : > { %p975_p4 = por %p967_p1, %p40_p0  ;;  %s909_s29 = smov [#allocation4]  }
   0x9   : > { %p982_p5 = pnand %p631_p2, %p166_p3  ;;  %s179_s30 = sshll.u32 %s909_s29, 4  ;;  %s180_s30 = int_to_ptr.vmem [resolvable:$true] %s179_s30 }
   0xa   : > { %s192_s9 = sshll.u32 %s1134_s3, 4  ;;  %s910_s10 = smov 128   ;;  %s193_s9 = int_to_ptr.hbm [resolvable:$true] %s192_s9 }
   0xb   : > { %p670_p6 = pneg %p982_p5  ;;  %s911_s11 = smov 8  }
   0xc   : > { %s912_s12 = smov [#allocation6]   ;;  %s203_s16 = sshll.u32 %s1135_s4, 4  ;;  %s204_s16 = int_to_ptr.hbm [resolvable:$true] %s203_s16 }
   0xd   : > { %p990_p7 = pnand %p670_p6, %p967_p1  ;;  %s194_s13 = sshll.u32 %s912_s12, 4  ;;  %s195_s13 = int_to_ptr.vmem [resolvable:$true] %s194_s13 }
   0xe   : > { %s913_s17 = smov [#allocation7]   ;;  %s1008_s25 = sadd.s32 1, %s907_s21  }
   0xf   : > { %673 = dma.hbm_to_vmem [thread:$0]  (!%p990_p7), %s178_s27, 256, %s180_s30, [#allocation5], %s910_s10, %s910_s10, %s911_s11  }
  0x10   : > { %676 = dma.hbm_to_vmem [thread:$0]  (!%p990_p7), %s193_s9, 128, %s195_s13, [#allocation5]  }
  0x11   : > { %s205_s18 = sshll.u32 %s913_s17, 4  ;;  %s24_s26 = ssub.s32 %s907_s21, %s1008_s25  ;;  %s206_s18 = int_to_ptr.vmem [resolvable:$true] %s205_s18 }
  0x12   : > { %679 = dma.hbm_to_vmem [thread:$0]  (!%p990_p7), %s204_s16, 256, %s206_s18, [#allocation8], %s910_s10, %s910_s10, %s911_s11  }
  0x13   : > { %s27_s27 = sadd.s32 1, %s903_s20  ;;  %p25_p8 = scmp.eq.s32.totalorder %s24_s26, 0 }
  0x14   : > { %p34_p9 = scmp.ne.s32.totalorder %s903_s20, %s899_s19  ;;  %p35_p10 = scmp.eq.s32.totalorder %s907_s21, 0 }
  0x15   : > { %p687_p11 = scmp.lt.s32.totalorder %s907_s21, 2  ;;  %s219_s30 = sand.u32 1, %s903_s20  }
  0x16   : > { %s1023_s29 = scalar_select %p25_p8, %s903_s20, %s27_s27  }
  0x17   : > { %p36_p12 = por %p35_p10, %p34_p9  ;;  %s636_s7 = sshll.u32 %s219_s30, 4 }
  0x18   : > { %s652_s8 = sshll.u32 %s907_s21, 4  ;;  %s223_s13 = scalar_lea.vmem [#allocation2], %s636_s7 }
  0x19   : > { %s228_s6 = scalar_lea.hbm %s1131_s0, %s652_s8  ;;  %s231_s14 = sshll.u32 %s223_s13, 4  ;;  %s232_s14 = int_to_ptr.vmem [resolvable:$true] %s231_s14 }
  0x1a   : > { %s229_s15 = sshll.u32 %s228_s6, 4  ;;  %p1030_p13 = pnand %p687_p11, %p36_p12  ;;  %s230_s15 = int_to_ptr.hbm [resolvable:$true] %s229_s15 }
  0x1b   : > { %s220_s17 = scalar_lea.sflag [#allocation3], %s219_s30  ;;  %s835_s18 = sshra.s32 %s230_s15, 4  ;;  %s836_s18 = int_to_ptr.hbm [resolvable:$true] %s835_s18 }
  0x1c   : > { %s837_s26 = scalar_lea.hbm %s836_s18, 16  ;;  %p839_p2 = pneg %p1030_p13 }
  0x1d   : > { %p838_p0 = scmp.ne.s32.totalorder %s836_s18, %s837_s26  ;;  %s842_s8 = scalar_lea.hbm %s1131_s0, 32 }
  0x1e   : > { %p843_p7 = scmp.lt.s32.totalorder %s836_s18, %s1131_s0  ;;  %p844_p8 = scmp.lt.s32.totalorder %s842_s8, %s837_s26 }
  0x1f   : > { %p840_p3 = pnand %p839_p2, %p838_p0 }
  0x20   : > { %p845_p9 = por %p844_p8, %p843_p7 }
  0x21   : > { %p841_p6 = pneg %p840_p3 }
  0x23   : > { %p846_p10 = pnand %p845_p9, %p841_p6 }
  0x25   : > { %849 = shalt.err (!%p846_p10)
}
  0x26   : > { %683 = dma.hbm_to_vmem [thread:$0]  (!%p1030_p13), %s230_s15, 256, %s232_s14, %s220_s17, %s910_s10, %s910_s10, %s911_s11  }
  0x27   : > { %251 = sbr.rel (%p982_p5) target bundleno = 377 (0x179), region = 40  ;;  %s253_s30 = sand.u32 (!%p982_p5), 1, %s899_s19  }
  0x28   : > { %s640_s6 = sshll.u32 (!%p982_p5), %s253_s30, 4  ;;  %s254_s13 = scalar_lea.sflag (!%p982_p5), [#allocation3], %s253_s30 }
  0x29   : > { %s257_s27 = scalar_lea.vmem (!%p982_p5), [#allocation2], %s640_s6 }
  0x2c   : > { %882 = dma.done.wait (%p975_p4), %s254_s13, 256  }
  0x2d   : > { %884 = vsyncadd (%p975_p4), %s254_s13, 4294967040 }
  0x2e   : > { %886 = dma.done.wait (%p967_p1), [#allocation5], 384  }
  0x2f   : > { %888 = vsyncadd (%p967_p1), [#allocation5], 4294966912 }
  0x30   : > { %890 = dma.done.wait (%p967_p1), [#allocation8], 256  }
  0x31   : > { %892 = vsyncadd (%p967_p1), [#allocation8], 4294967040  ;;  %s644_s28 = sshll.u32 %s629_s22, 1  ;;  %v371_v0 = vlaneseq  ;;  %v914_v1 = vmov 0   ;;  %v326_v4 = vld [vmem:[#allocation4 + $0x8] sm:$0xff]  ;;  %v325_v5 = vld [vmem:[#allocation4] sm:$0xff] }
  0x32   : > { %729 = vset.pattern.permute.xlu0 %v914_v1  ;;  %p307_p5 = scmp.lt.s32.totalorder %s644_s28, 3  ;;  %730 = vset.pattern.permute.xlu1 %v914_v1  ;;  %v323_v6 = vld [vmem:[%s257_s27] sm:$0xff]  ;;  %vm328_vm0 = vcmask 130048   ;;  %v324_v7 = vld [vmem:[%s257_s27 + $0x8] sm:$0xff]  ;;  %vm364_vm5 = vcmask 1040384   ;;  %vm413_vm8 = vcmask 1041408  }
  0x33   : > { %v372_v2 = vshrl.u32 %v371_v0, 7  ;;  %349 = vmatpush.msra.mxu0 %v326_v4  ;;  %654 = vmatpush.msra.mxu1 %v326_v4  ;;  %v733_v16 = vld [vmem:[#allocation6] ss:$0 sm:$0xff]  ;;  %v319_v23 = vld [vmem:[#allocation6 + $0x1] sm:$0x1]  ;;  %v405_v27 = vld [vmem:[#allocation7] sm:$0xff] }
  0x34   : > { %s1147_s28 = smov (!%p307_p5, %s644_s28), 3  ;;  %v734_v24 = vld [vmem:[#allocation6 + $0x2] ss:$0 sm:$0xff]  ;;  %v406_v28 = vld [vmem:[#allocation7 + $0x8] sm:$0x3] }
  0x35   : > { %s309_s11 = scalar_lea.vmem %s1132_s1, %s1147_s28  ;;  %v373_v3 = vadd.s32 8, %v372_v2  ;;  %350 = vmatpush.msra.mxu0 %v325_v5  ;;  %655 = vmatpush.msra.mxu1 %v325_v5  ;;  %s653_s21 = sshll.u32 %s1147_s28, 4 }
  0x36   : > { %v731_v8 = vld [vmem:[%s309_s11] ss:$0 sm:$0xff]  ;;  %v732_v9 = vld [vmem:[%s309_s11 + $0x1] ss:$0 sm:$0xff]  ;;  %648 = vmatmul.msk.f32.vlgmr.msra.gmra.mxu0 %vm328_vm0, %v323_v6  ;;  %649 = vmatmul.msk.f32.vlgmr.msra.gmra.mxu1 %vm328_vm0, %v324_v7  ;;  %s1107_s14 = scalar_lea.vmem %s1136_s5, %s653_s21 }
  0x37   : > { %vm377_vm1 = vcmp.eq.s32.totalorder %v373_v3, %v731_v8  ;;  %vm379_vm2 = vcmp.eq.s32.totalorder %v373_v3, %v732_v9  ;;  %vm376_vm3 = vcmp.eq.s32.totalorder %v372_v2, %v731_v8  ;;  %vm378_vm4 = vcmp.eq.s32.totalorder %v372_v2, %v732_v9 }
  0x38   : > { %v381_v10 = vsel %vm377_vm1, 1, %v914_v1  ;;  %v383_v11 = vsel %vm379_vm2, 1, %v914_v1  ;;  %v380_v12 = vsel %vm376_vm3, 1, %v914_v1  ;;  %v382_v13 = vsel %vm378_vm4, 1, %v914_v1 }
  0x39   : > { %388 = vperm.xlu0 %729, %v381_v10   ;;  %394 = vperm.xlu1 %730, %v383_v11  }
  0x41   : > { %385 = vperm.xlu0 %729, %v380_v12   ;;  %391 = vperm.xlu1 %730, %v382_v13  }
  0xab   : > { %v395_v14 = vpop.permute.xlu1 %394  ;;  %v389_v15 = vpop.permute.xlu0 %388 }
  0xac   : > { %vm399_vm6 = vcmp.eq.s32.totalorder %v395_v14, 1  ;;  %vm397_vm10 = vcmp.eq.s32.totalorder %v389_v15, 1 }
  0xb3   : > { %v392_v17 = vpop.permute.xlu1 %391  ;;  %v352_v18 = vpop.f32.mrf.mxu0 }
  0xb4   : > { %v355_v19 = vpop.f32.mrf.mxu1  ;;  %v353_v20 = vadd.f32 %v733_v16, %v352_v18  ;;  %v386_v22 = vpop.permute.xlu0 %385  ;;  %vm398_vm7 = vcmp.eq.s32.totalorder %v392_v17, 1 }
  0xb5   : > { %v356_v21 = vadd.f32 %v733_v16, %v355_v19  ;;  %vm396_vm9 = vcmp.eq.s32.totalorder %v386_v22, 1  ;;  %v735_v22 = vld [vmem:[#allocation6 + $0x3] ss:$0 sm:$0xff] }
  0xb6   : > { %v360_v25 = vrot.slane %v353_v20, 7 }
  0xb7   : > { %v361_v26 = vrot.slane %v356_v21, 7 }
  0xb8   : > { %v365_v29 = vsel %vm364_vm5, %v319_v23, %v360_v25  ;;  %v367_v32 = vsel %vm364_vm5, %v360_v25, 0.0 }
  0xb9   : > { %v368_v30 = vsel %vm364_vm5, %v361_v26, 0.0  ;;  %v366_v31 = vsel %vm364_vm5, %v319_v23, %v361_v26  ;;  %v401_v35 = vsel %vm396_vm9, %v734_v24, %v365_v29  ;;  %v402_v39 = vsel %vm397_vm10, %v734_v24, %v367_v32  ;;  %v736_v26 = vld [vmem:[#allocation6 + $0x4] ss:$0 sm:$0xff] }
  0xba   : > { %v404_v33 = vsel %vm399_vm6, %v734_v24, %v368_v30  ;;  %v403_v34 = vsel %vm398_vm7, %v734_v24, %v366_v31  ;;  %v1072_v37 = vadd.f32 %v405_v27, %v401_v35  ;;  %v1080_v41 = vadd.f32 %v406_v28, %v402_v39 }
  0xbb   : > { %v1070_v36 = vadd.f32 %v405_v27, %v403_v34  ;;  %v1074_v38 = vadd.f32 %v406_v28, %v404_v33 }
  0xbc   : > { %411 = vadd.xlane.f32.xlu2 %v1072_v37  ;;  %v414_v42 = vsel %vm413_vm8, %v1080_v41, 0.0  ;;  %v422_v43 = vmul.f32 %v1072_v37, %v1072_v37  ;;  %v423_v45 = vmul.f32 %v1080_v41, %v1080_v41 }
  0xbd   : > { %417 = vadd.xlane.f32.xlu0 %v1070_v36  ;;  %v419_v40 = vsel %vm413_vm8, %v1074_v38, 0.0  ;;  %v424_v44 = vmul.f32 %v1070_v36, %v1070_v36  ;;  %v425_v47 = vmul.f32 %v1074_v38, %v1074_v38 }
  0xbe   : > { %420 = vadd.xlane.f32.xlu1 %v419_v40  ;;  %v428_v46 = vsel %vm413_vm8, %v423_v45, 0.0 }
  0xbf   : > { %v433_v48 = vsel %vm413_vm8, %v425_v47, 0.0 }
  0xc4   : > { %415 = vadd.xlane.f32.xlu2 %v414_v42 }
  0xcc   : > { %426 = vadd.xlane.f32.xlu2 %v422_v43 }
  0xd4   : > { %431 = vadd.xlane.f32.xlu2 %v424_v44 }
  0xdc   : > { %429 = vadd.xlane.f32.xlu2 %v428_v46 }
  0xe4   : > { %434 = vadd.xlane.f32.xlu2 %v433_v48 }
 0x12f   : > { %v412_v49 = vpop.xlane.xlu2 %411 }
 0x130   : > { %v436_v51 = vmul.f32 0.0078125, %v412_v49  ;;  %v418_v56 = vpop.xlane.xlu0 %417 }
 0x131   : > { %v438_v58 = vmul.f32 0.0078125, %v418_v56  ;;  %v421_v10 = vpop.xlane.xlu1 %420 }
 0x132   : > { %v444_v53 = vmul.f32 %v436_v51, %v436_v51  ;;  %v1098_v15 = vmul.f32 0.0078125, %v421_v10  ;;  %v456_v20 = vsub.f32 %v1072_v37, %v436_v51 }
 0x133   : > { %v446_v61 = vmul.f32 %v438_v58, %v438_v58  ;;  %v458_v40 = vsub.f32 %v1070_v36, %v438_v58 }
 0x134   : > { %v447_v21 = vmul.f32 %v1098_v15, %v1098_v15 }
 0x137   : > { %v416_v50 = vpop.xlane.xlu2 %415 }
 0x138   : > { %v1094_v0 = vmul.f32 0.0078125, %v416_v50 }
 0x13a   : > { %v445_v6 = vmul.f32 %v1094_v0, %v1094_v0  ;;  %v457_v36 = vsub.f32 %v1080_v41, %v1094_v0 }
 0x13f   : > { %v427_v52 = vpop.xlane.xlu2 %426 }
 0x140   : > { %v440_v54 = vmul.f32 0.0078125, %v427_v52 }
 0x142   : > { %v448_v55 = vsub.f32 %v440_v54, %v444_v53 }
 0x144   : > { %v452_v57 = vmax.f32 %v448_v55, 0.0 }
 0x146   : > { %v460_v59 = vadd.f32 1e-05, %v452_v57 }
 0x147   : > { %v432_v60 = vpop.xlane.xlu2 %431 }
 0x148   : > { %737 = vrsqrt.f32 %v460_v59  ;;  %v442_v62 = vmul.f32 0.0078125, %v432_v60  ;;  %vm470_vm12 = vweird.f32 %v460_v59  ;;  %v459_v60 = vsub.f32 %v1074_v38, %v1098_v15 }
 0x14a   : > { %v450_v63 = vsub.f32 %v442_v62, %v446_v61 }
 0x14c   : > { %v454_v1 = vmax.f32 %v450_v63, 0.0 }
 0x14e   : > { %v738_v2 = vpop.eup %737  ;;  %v462_v3 = vadd.f32 1e-05, %v454_v1 }
 0x14f   : > { %v465_v4 = vmul.f32 %v738_v2, %v460_v59  ;;  %v430_v5 = vpop.xlane.xlu2 %429  ;;  %vm471_vm11 = vweird.f32 %v738_v2 }
 0x150   : > { %739 = vrsqrt.f32 %v462_v3  ;;  %v441_v7 = vmul.f32 0.0078125, %v430_v5  ;;  %vm472_vm13 = vmor %vm470_vm12, %vm471_vm11  ;;  %vm490_vm15 = vweird.f32 %v462_v3 }
 0x151   : > { %v466_v8 = vmul.f32 %v738_v2, %v465_v4 }
 0x152   : > { %v449_v9 = vsub.f32 %v441_v7, %v445_v6 }
 0x153   : > { %v467_v11 = vmul.f32 0.5, %v466_v8 }
 0x154   : > { %v453_v12 = vmax.f32 %v449_v9, 0.0 }
 0x155   : > { %v468_v13 = vsub.f32 1.5, %v467_v11 }
 0x156   : > { %v740_v14 = vpop.eup %739  ;;  %v461_v16 = vadd.f32 1e-05, %v453_v12 }
 0x157   : > { %v469_v17 = vmul.f32 %v738_v2, %v468_v13  ;;  %v485_v18 = vmul.f32 %v740_v14, %v462_v3  ;;  %v435_v19 = vpop.xlane.xlu2 %434  ;;  %vm491_vm14 = vweird.f32 %v740_v14 }
 0x158   : > { %741 = vrsqrt.f32 %v461_v16  ;;  %v443_v23 = vmul.f32 0.0078125, %v435_v19  ;;  %vm492_vm0 = vmor %vm490_vm15, %vm491_vm14  ;;  %vm480_vm2 = vweird.f32 %v461_v16 }
 0x159   : > { %v473_v24 = vsel %vm472_vm13, %v738_v2, %v469_v17  ;;  %v486_v25 = vmul.f32 %v740_v14, %v485_v18 }
 0x15a   : > { %v504_v27 = vmul.f32 %v473_v24, %v456_v20  ;;  %v451_v28 = vsub.f32 %v443_v23, %v447_v21 }
 0x15b   : > { %v487_v29 = vmul.f32 0.5, %v486_v25 }
 0x15c   : > { %v509_v30 = vmul.f32 %v735_v22, %v504_v27  ;;  %v455_v31 = vmax.f32 %v451_v28, 0.0 }
 0x15d   : > { %v488_v32 = vsub.f32 1.5, %v487_v29 }
 0x15e   : > { %v742_v33 = vpop.eup %741  ;;  %v514_v34 = vadd.f32 %v736_v26, %v509_v30  ;;  %v463_v35 = vadd.f32 1e-05, %v455_v31 }
 0x15f   : > { %v489_v37 = vmul.f32 %v740_v14, %v488_v32  ;;  %v475_v39 = vmul.f32 %v742_v33, %v461_v16  ;;  %vm481_vm1 = vweird.f32 %v742_v33 }
 0x160   : > { %518 = vst [vmem:[%s1107_s14] sm:$0xff] %v514_v34  ;;  %743 = vrsqrt.f32 %v463_v35  ;;  %vm482_vm3 = vmor %vm480_vm2, %vm481_vm1  ;;  %vm500_vm5 = vweird.f32 %v463_v35 }
 0x161   : > { %v493_v42 = vsel %vm492_vm0, %v740_v14, %v489_v37  ;;  %v476_v43 = vmul.f32 %v742_v33, %v475_v39 }
 0x162   : > { %v506_v44 = vmul.f32 %v493_v42, %v458_v40 }
 0x163   : > { %v477_v45 = vmul.f32 0.5, %v476_v43 }
 0x164   : > { %v511_v46 = vmul.f32 %v735_v22, %v506_v44 }
 0x165   : > { %v478_v47 = vsub.f32 1.5, %v477_v45 }
 0x166   : > { %v744_v48 = vpop.eup %743  ;;  %v516_v49 = vadd.f32 %v736_v26, %v511_v46 }
 0x167   : > { %v479_v50 = vmul.f32 %v742_v33, %v478_v47  ;;  %v495_v51 = vmul.f32 %v744_v48, %v463_v35  ;;  %vm501_vm4 = vweird.f32 %v744_v48 }
 0x168   : > { %520 = vst [vmem:[%s1107_s14 + $0x10] sm:$0xff] %v516_v49  ;;  %vm502_vm6 = vmor %vm500_vm5, %vm501_vm4 }
 0x169   : > { %v483_v52 = vsel %vm482_vm3, %v742_v33, %v479_v50  ;;  %v496_v53 = vmul.f32 %v744_v48, %v495_v51 }
 0x16a   : > { %v505_v54 = vmul.f32 %v483_v52, %v457_v36 }
 0x16b   : > { %v497_v55 = vmul.f32 0.5, %v496_v53 }
 0x16c   : > { %v510_v56 = vmul.f32 %v735_v22, %v505_v54 }
 0x16d   : > { %v498_v57 = vsub.f32 1.5, %v497_v55 }
 0x16e   : > { %v515_v58 = vadd.f32 %v736_v26, %v510_v56 }
 0x16f   : > { %v499_v59 = vmul.f32 %v744_v48, %v498_v57 }
 0x170   : > { %519 = vst [vmem:[%s1107_s14 + $0x8] sm:$0x3] %v515_v58 }
 0x171   : > { %v503_v61 = vsel %vm502_vm6, %v744_v48, %v499_v59 }
 0x172   : > { %v507_v41 = vmul.f32 %v503_v61, %v459_v60 }
 0x174   : > { %v512_v62 = vmul.f32 %v735_v22, %v507_v41 }
 0x176   : > { %v517_v63 = vadd.f32 %v736_v26, %v512_v62 }
 0x178   : > { %521 = vst [vmem:[%s1107_s14 + $0x18] sm:$0x3] %v517_v63 }
 0x179 PF: > { %p17_p1 = scmp.ge.s32.totalorder %s1008_s25, 4   ;;  %s1142_s18 = smov %s899_s19 }
 0x17a   : > { %s1143_s19 = smov %s903_s20  ;;  %s1144_s20 = smov %s1023_s29 }
 0x17b   : > { %s1145_s21 = smov %s1008_s25  ;;  %19 = sbr.rel (!%p17_p1) target bundleno = 5 (0x5), region = 95 }
 0x180   :  { %546 = vsyncpa [#allocation3], 1 }
 0x181   :  { %548 = vsyncpa [#allocation3 + $0x1], 1 }
 0x182   :  { %549 = vsyncpa [#allocation5], 1 }
 0x183   :  { %550 = vsyncpa [#allocation8], 1 }

</bundles_post_ra>
